<compile_context>
chip_gen: v5e
topology: v5e:2x2
jax: 0.10.0
libtpu: 0.0.40
codegen_flags: <defaults>
</compile_context>

<pallas_src>
import math
from functools import partial

import jax
import jax.numpy as jnp
from jax.experimental import pallas as pl
from jax.experimental.pallas import tpu as pltpu


# ---------------- small static helpers ----------------

def _round_up(x, m):
    return ((x + m - 1) // m) * m


def _log_t_py(u, t):
    return math.log(u) if t == 1.0 else (u ** (1.0 - t) - 1.0) / (1.0 - t)


def _smoothed_onehot_values(n_cls, smoothing):
    if smoothing > 0.0:
        on = 1.0 - smoothing * n_cls / (n_cls - 1) + smoothing / (n_cls - 1)
        off = smoothing / (n_cls - 1)
    else:
        on, off = 1.0, 0.0
    return on, off


def _label_only_constant(n_cls, t1, smoothing):
    """Per-row constant sum_c[lab*log_t(lab+1e-10,t1) - lab^(2-t1)/(2-t1)] for a
    (smoothed) hard one-hot label. Data independent -> hoisted out of the kernel."""
    on, off = _smoothed_onehot_values(n_cls, smoothing)

    def term(v):
        return v * _log_t_py(v + 1e-10, t1) - (v ** (2.0 - t1)) / (2.0 - t1)

    return term(on) + (n_cls - 1) * term(off)


# ---------------- Pallas kernel ----------------
# Layout: act_ref (C, block_cols) f32 — classes on sublanes, batch on lanes.
#         lab_ref (1, block_cols) int32 (hard labels) or (C, block_cols) f32.
#         out_ref (1, 1, 1) f32 — per-"parallel-index" resident accumulator.

def _bitempered_loss_kernel(act_ref, lab_ref, out_ref, *, t1, t2, smoothing,
                            num_iters, n_valid, block_cols, n_cls,
                            labels_are_int):
    pid = pl.program_id(0)          # "parallel" axis (v7x dual-TC split)
    tid = pl.program_id(1)          # "arbitrary" reduction axis over batch tiles

    @pl.when(tid == 0)
    def _init():
        out_ref[...] = jnp.zeros_like(out_ref)

    act = act_ref[...]                                   # (C, Bc) f32
    one_m_t2 = 1.0 - t2
    inv_2mt1 = 1.0 / (2.0 - t1)

    # ---- labels ----
    if labels_are_int:
        on, off = _smoothed_onehot_values(n_cls, smoothing)
        cls_iota = jax.lax.broadcasted_iota(jnp.int32, (n_cls, block_cols), 0)
        lab = jnp.where(cls_iota == lab_ref[...], jnp.float32(on), jnp.float32(off))
    else:
        lab = lab_ref[...]
        if smoothing > 0.0:
            lab = (1.0 - smoothing * n_cls / (n_cls - 1)) * lab + smoothing / (n_cls - 1)

    # ---- tempered softmax (class reductions are sublane reductions, axis 0) ----
    mu = jnp.max(act, axis=0, keepdims=True)             # (1, Bc)
    u0 = act - mu

    if t2 == 1.0:
        lse = jnp.log(jnp.sum(jnp.exp(u0), axis=0, keepdims=True))
        log_probs = u0 - lse
        probs_pow = lambda c: jnp.exp(c * log_probs)
        p_2mt1 = probs_pow(2.0 - t1)
        if t1 == 1.0:
            logt_probs = log_probs
        else:
            logt_probs = (probs_pow(1.0 - t1) - 1.0) / (1.0 - t1)
    else:
        inv_1mt2 = 1.0 / one_m_t2

        def exp_t2(x):
            base = 1.0 + one_m_t2 * x
            if t2 > 1.0:                                  # base >= 1: no guard needed
                return jnp.exp(inv_1mt2 * jnp.log(base))
            pos = base > 0.0
            return jnp.where(pos,
                             jnp.exp(inv_1mt2 * jnp.log(jnp.where(pos, base, 1.0))),
                             0.0)

        if t2 > 1.0:
            # fixed-point normalization (tail heaviness)
            na = u0
            for _ in range(num_iters):
                lp = jnp.sum(exp_t2(na), axis=0, keepdims=True)       # >= 1
                na = u0 * jnp.exp(one_m_t2 * jnp.log(lp))             # * lp^(1-t2)
            lp = jnp.sum(exp_t2(na), axis=0, keepdims=True)
            # norm - mu = -log_t(1/lp, t2) = (lp^(t2-1) - 1) / (t2 - 1)
            norm_m_mu = (jnp.exp(-one_m_t2 * jnp.log(lp)) - 1.0) / (t2 - 1.0)
        else:
            # binary-search normalization (finite support, t2 < 1)
            eff_dim = jnp.sum((u0 > -inv_1mt2).astype(jnp.float32),
                              axis=0, keepdims=True)
            lower = jnp.zeros_like(mu)
            upper = (jnp.exp(-one_m_t2 * jnp.log(eff_dim)) - 1.0) / (t2 - 1.0)
            for _ in range(num_iters):
                mid = 0.5 * (upper + lower)
                sp = jnp.sum(exp_t2(u0 - mid), axis=0, keepdims=True)
                upd = sp < 1.0
                lower = jnp.where(upd, lower, mid)
                upper = jnp.where(upd, mid, upper)
            norm_m_mu = 0.5 * (upper + lower)

        # ---- epilogue: single shared log of the exp_t base ----
        base = 1.0 + one_m_t2 * (u0 - norm_m_mu)          # = 1 + (1-t2)*(act - norm)
        if t2 > 1.0:
            lb = jnp.log(base)                            # base >= 1 always
            probs_pow = lambda c: jnp.exp((c * inv_1mt2) * lb)
            p_2mt1 = probs_pow(2.0 - t1)
            if t1 == 1.0:
                logt_probs = inv_1mt2 * lb
            else:
                logt_probs = (probs_pow(1.0 - t1) - 1.0) / (1.0 - t1)
        else:
            base = jnp.maximum(base, 0.0)
            pos = base > 0.0
            lb = jnp.log(jnp.where(pos, base, 1.0))
            probs_pow = lambda c: jnp.where(pos, jnp.exp((c * inv_1mt2) * lb), 0.0)
            p_2mt1 = probs_pow(2.0 - t1)
            if t1 == 1.0:
                # matches the reference: log(0) = -inf on zero-support classes
                logt_probs = jnp.where(pos, inv_1mt2 * lb, -jnp.inf)
            else:
                logt_probs = (probs_pow(1.0 - t1) - 1.0) / (1.0 - t1)

    loss_el = p_2mt1 * inv_2mt1 - lab * logt_probs        # (C, Bc)

    if not labels_are_int:
        # label-only terms cannot be hoisted for general soft labels
        llab = jnp.log(lab + 1e-10)
        if t1 == 1.0:
            logt_lab = llab
        else:
            logt_lab = (jnp.exp((1.0 - t1) * llab) - 1.0) / (1.0 - t1)
        lab_pos = lab > 0.0
        lab_pow = jnp.where(lab_pos,
                            jnp.exp((2.0 - t1) * jnp.log(jnp.where(lab_pos, lab, 1.0))),
                            0.0)
        loss_el = loss_el + lab * logt_lab - lab_pow * inv_2mt1

    loss_cols = jnp.sum(loss_el, axis=0, keepdims=True)   # (1, Bc): per-example loss

    # Mask columns beyond the true batch size: covers the implicit padding of
    # the partial tail tile and clamped duplicate tiles (select discards any
    # garbage / NaN in those columns).
    global_blk = pid * pl.num_programs(1) + tid
    col_ids = global_blk * block_cols + jax.lax.broadcasted_iota(
        jnp.int32, (1, block_cols), 1)
    loss_cols = jnp.where(col_ids < n_valid, loss_cols, 0.0)

    out_ref[...] = out_ref[...] + jnp.sum(loss_cols, keepdims=True)


# ---------------- wrapper ----------------

def bi_tempered_logistic_loss_tpu(logits, labels, *, t1, t2, label_smoothing=0.0,
                                  num_iters=5, block_cols=None, num_parallel=2):
    """Mean bi-tempered logistic loss (matches BiTemperedLogisticLoss.forward).

    logits: (..., num_classes) float; labels: integer class ids (...,) or
    float (soft / one-hot) labels of the same shape as logits."""
    n_cls = logits.shape[-1]
    act = logits.reshape(-1, n_cls).astype(jnp.float32)
    n = act.shape[0]

    labels_are_int = labels.ndim < logits.ndim
    if labels_are_int:
        lab_arg = labels.reshape(1, n).astype(jnp.int32)              # (1, B)
    else:
        lab_arg = labels.reshape(n, n_cls).astype(jnp.float32).T      # (C, B)

    act_t = act.T                                                     # (C, B): batch -> lanes

    # Tile the batch (lane) axis; class axis kept at full extent on sublanes.
    if block_cols is None:
        per_col_bytes = 4 * 2 * (n_cls + (1 if labels_are_int else n_cls))
        vmem_cap = max(128, ((8 << 20) // per_col_bytes) // 128 * 128)
        block_cols = min(8192, vmem_cap)
    block_cols = max(128, _round_up(int(block_cols), 128))
    block_cols = min(block_cols, _round_up(n, 128))

    num_col_blocks = -(-n // block_cols)
    num_parallel = max(1, int(num_parallel))
    tiles_per_core = -(-num_col_blocks // num_parallel)
    last_block = num_col_blocks - 1

    def col_map(p, t):
        # Clamp so (duplicate) tiles past the real extent stay in bounds; their
        # columns are discarded by the in-kernel col < n_valid mask.
        return (0, jnp.minimum(p * tiles_per_core + t, last_block))

    in_specs = [
        pl.BlockSpec((n_cls, block_cols), col_map),
        pl.BlockSpec((1, block_cols) if labels_are_int else (n_cls, block_cols),
                     col_map),
    ]

    kernel = partial(_bitempered_loss_kernel,
                     t1=float(t1), t2=float(t2), smoothing=float(label_smoothing),
                     num_iters=int(num_iters), n_valid=int(n),
                     block_cols=int(block_cols), n_cls=int(n_cls),
                     labels_are_int=labels_are_int)

    partial_sums = pl.pallas_call(
        kernel,
        out_shape=jax.ShapeDtypeStruct((num_parallel, 1, 1), jnp.float32),
        grid=(num_parallel, tiles_per_core),
        in_specs=in_specs,
        out_specs=pl.BlockSpec((1, 1, 1), lambda p, t: (p, 0, 0)),
        compiler_params=pltpu.CompilerParams(
            dimension_semantics=("parallel", "arbitrary"),
            vmem_limit_bytes=32 * 1024 * 1024),
    )(act_t, lab_arg)

    loss = jnp.sum(partial_sums) / float(n)
    if labels_are_int:
        loss = loss + jnp.float32(
            _label_only_constant(n_cls, float(t1), float(label_smoothing)))
    return loss


class BiTemperedLogisticLoss:
    """Mirror of the PyTorch module: forward(logit_label, truth_label) -> scalar."""

    def __init__(self, t1, t2, smoothing=0.0):
        self.t1, self.t2, self.smoothing = t1, t2, smoothing

    def __call__(self, logit_label, truth_label):
        # reduction='none' followed by .mean() == mean over all rows.
        return bi_tempered_logistic_loss_tpu(
            logit_label, truth_label, t1=self.t1, t2=self.t2,
            label_smoothing=self.smoothing)


# ---------------- pure-JAX reference (independent transcription of PyTorch) ----------------

def _log_t_ref(u, t):
    if t == 1.0:
        return jnp.log(u)
    return (u ** (1.0 - t) - 1.0) / (1.0 - t)


def _exp_t_ref(u, t):
    if t == 1.0:
        return jnp.exp(u)
    return jnp.maximum(1.0 + (1.0 - t) * u, 0.0) ** (1.0 / (1.0 - t))


def _reference_loss(logits, labels, t1, t2, smoothing, num_iters=5):
    n_cls = logits.shape[-1]
    act = logits.reshape(-1, n_cls).astype(jnp.float32)
    if labels.ndim < logits.ndim:
        lab = jax.nn.one_hot(labels.reshape(-1), n_cls, dtype=jnp.float32)
    else:
        lab = labels.reshape(-1, n_cls).astype(jnp.float32)
    if smoothing > 0.0:
        lab = (1.0 - smoothing * n_cls / (n_cls - 1)) * lab + smoothing / (n_cls - 1)

    if t2 == 1.0:
        probs = jax.nn.softmax(act, axis=-1)
    else:
        mu = jnp.max(act, axis=-1, keepdims=True)
        na = act - mu
        if t2 > 1.0:
            na0 = na
            for _ in range(num_iters):
                lp = jnp.sum(_exp_t_ref(na, t2), axis=-1, keepdims=True)
                na = na0 * lp ** (1.0 - t2)
            lp = jnp.sum(_exp_t_ref(na, t2), axis=-1, keepdims=True)
            norm = -_log_t_ref(1.0 / lp, t2) + mu
        else:
            eff = jnp.sum((na > -1.0 / (1.0 - t2)).astype(jnp.float32),
                          axis=-1, keepdims=True)
            lower = jnp.zeros_like(mu)
            upper = -_log_t_ref(1.0 / eff, t2) * jnp.ones_like(mu)
            for _ in range(num_iters):
                lp = 0.5 * (upper + lower)
                sp = jnp.sum(_exp_t_ref(na - lp, t2), axis=-1, keepdims=True)
                upd = (sp < 1.0).astype(jnp.float32)
                lower = lower * upd + (1.0 - upd) * lp
                upper = upper * (1.0 - upd) + upd * lp
            norm = 0.5 * (upper + lower) + mu
        probs = _exp_t_ref(act - norm, t2)

    lv = (lab * _log_t_ref(lab + 1e-10, t1) - lab * _log_t_ref(probs, t1)
          - lab ** (2.0 - t1) / (2.0 - t1) + probs ** (2.0 - t1) / (2.0 - t1))
    return jnp.mean(jnp.sum(lv, axis=-1))


if __name__ == "__main__":
    key = jax.random.PRNGKey(0)
    k_logit, k_label = jax.random.split(key)
    batch, n_cls = 20, 5                       # CFG.target_size = 5 classes
    logits = 2.0 * jax.random.normal(k_logit, (batch, n_cls), jnp.float32)
    labels = jax.random.randint(k_label, (batch,), 0, n_cls)

    def check(loss, ref, tag):
        loss = jax.block_until_ready(loss)
        assert loss.shape == () and bool(jnp.isfinite(loss)), tag
        assert abs(float(loss) - float(ref)) <= 1e-4 * max(1.0, abs(float(ref))), (
            tag, float(loss), float(ref))

    for (t1, t2, sm) in [(0.8, 1.4, 0.2),      # fixed-point normalization (t2 > 1)
                         (0.5, 0.7, 0.0),      # binary-search normalization (t2 < 1)
                         (1.0, 1.0, 0.1)]:     # plain softmax path
        loss = bi_tempered_logistic_loss_tpu(logits, labels, t1=t1, t2=t2,
                                             label_smoothing=sm)
        check(loss, _reference_loss(logits, labels, t1, t2, sm), (t1, t2, sm))

    # Bigger ragged batch with small block_cols: exercises multi-tile
    # accumulation, the implicit partial tail tile and the clamped duplicate
    # tile on the parallel axis.
    kb1, kb2 = jax.random.split(jax.random.PRNGKey(1))
    b2 = 333
    logits2 = 3.0 * jax.random.normal(kb1, (b2, n_cls), jnp.float32)
    labels2 = jax.random.randint(kb2, (b2,), 0, n_cls)
    loss2 = bi_tempered_logistic_loss_tpu(logits2, labels2, t1=0.8, t2=1.4,
                                          label_smoothing=0.2, block_cols=128)
    check(loss2, _reference_loss(logits2, labels2, 0.8, 1.4, 0.2), "multi-tile")

    # Soft (float one-hot) label path.
    onehot = jax.nn.one_hot(labels, n_cls, dtype=jnp.float32)
    loss3 = bi_tempered_logistic_loss_tpu(logits, onehot, t1=0.9, t2=1.2,
                                          label_smoothing=0.1)
    check(loss3, _reference_loss(logits, onehot, 0.9, 1.2, 0.1), "soft-labels")

    # Module-style usage (matches BiTemperedLogisticLoss.forward).
    criterion = BiTemperedLogisticLoss(t1=0.8, t2=1.4, smoothing=0.2)
    loss = jax.block_until_ready(criterion(logits, labels))
    assert loss.shape == ()
    print("KERNEL_OK")
</pallas_src>

<mosaic_0001>
module attributes {stable_mosaic.version = 11 : i64} {
  func.func @_bitempered_loss_kernel(%arg0: i32, %arg1: i32, %arg2: memref<5x128xf32, #tpu.memory_space<vmem>>, %arg3: memref<1x128xi32, #tpu.memory_space<vmem>>, %arg4: memref<1x1x1xf32, #tpu.memory_space<vmem>>) attributes {dimension_semantics = [#tpu.dimension_semantics<parallel>, #tpu.dimension_semantics<arbitrary>], iteration_bounds = array<i64: 2, 1>, scalar_prefetch = 0 : i64, scratch_operands = 0 : i64, tpu.core_type = #tpu.core_type<tc>, window_params = [{transform_indices = @transform_0, window_bounds = array<i64: 5, 128>}, {transform_indices = @transform_1, window_bounds = array<i64: 1, 128>}, {transform_indices = @transform_2, window_bounds = array<i64: 1, 1, 1>}]} {
    %c0_i32 = arith.constant 0 : i32
    %0 = arith.cmpi eq, %arg1, %c0_i32 : i32
    %1 = arith.extui %0 : i1 to i32
    %c0_i32_0 = arith.constant 0 : i32
    %2 = arith.cmpi ne, %1, %c0_i32_0 : i32
    scf.if %2 {
      %cst_54 = arith.constant 0.000000e+00 : f32
      %155 = vector.broadcast %cst_54 : f32 to vector<1x1x1xf32>
      %c0_55 = arith.constant 0 : index
      %c0_56 = arith.constant 0 : index
      %c0_57 = arith.constant 0 : index
      %156 = vector.load %arg4[%c0_55, %c0_56, %c0_57] : memref<1x1x1xf32, #tpu.memory_space<vmem>>, vector<1x1x1xf32>
      tpu.vector_store %arg4[%c0_55, %c0_56, %c0_57], %155 {strides = array<i32>} : memref<1x1x1xf32, #tpu.memory_space<vmem>>, vector<1x1x1xf32>,
    } else {
    }
    %c0 = arith.constant 0 : index
    %c0_1 = arith.constant 0 : index
    %3 = vector.load %arg2[%c0, %c0_1] : memref<5x128xf32, #tpu.memory_space<vmem>>, vector<5x128xf32>
    %4 = tpu.iota {dimensions = array<i32: 0>} : vector<5x128xi32>
    %c0_2 = arith.constant 0 : index
    %c0_3 = arith.constant 0 : index
    %5 = vector.load %arg3[%c0_2, %c0_3] : memref<1x128xi32, #tpu.memory_space<vmem>>, vector<1x128xi32>
    %6 = vector.broadcast %5 : vector<1x128xi32> to vector<5x128xi32>
    %7 = arith.cmpi eq, %4, %6 : vector<5x128xi32>
    %cst = arith.constant 8.000000e-01 : f32
    %cst_4 = arith.constant 5.000000e-02 : f32
    %8 = vector.broadcast %cst : f32 to vector<5x128xf32>
    %9 = vector.broadcast %cst_4 : f32 to vector<5x128xf32>
    %10 = arith.select %7, %8, %9 : vector<5x128xi1>, vector<5x128xf32>
    %cst_5 = arith.constant dense<0xFF800000> : vector<128xf32>
    %11 = vector.multi_reduction <maximumf>, %3, %cst_5 [0] : vector<5x128xf32> to vector<128xf32>
    %12 = vector.shape_cast %11 : vector<128xf32> to vector<1x128xf32>
    %13 = vector.broadcast %12 : vector<1x128xf32> to vector<5x128xf32>
    %14 = arith.subf %3, %13 : vector<5x128xf32>
    %cst_6 = arith.constant -4.000000e-01 : f32
    %15 = vector.broadcast %cst_6 : f32 to vector<5x128xf32>
    %16 = arith.mulf %15, %14 : vector<5x128xf32>
    %cst_7 = arith.constant 1.000000e+00 : f32
    %17 = vector.broadcast %cst_7 : f32 to vector<5x128xf32>
    %18 = arith.addf %17, %16 : vector<5x128xf32>
    %19 = math.log %18 : vector<5x128xf32>
    %cst_8 = arith.constant -2.500000e+00 : f32
    %20 = vector.broadcast %cst_8 : f32 to vector<5x128xf32>
    %21 = arith.mulf %20, %19 : vector<5x128xf32>
    %22 = math.exp %21 : vector<5x128xf32>
    %cst_9 = arith.constant dense<0.000000e+00> : vector<128xf32>
    %23 = vector.multi_reduction <add>, %22, %cst_9 [0] : vector<5x128xf32> to vector<128xf32>
    %24 = vector.shape_cast %23 : vector<128xf32> to vector<1x128xf32>
    %25 = math.log %24 : vector<1x128xf32>
    %cst_10 = arith.constant -4.000000e-01 : f32
    %26 = vector.broadcast %cst_10 : f32 to vector<1x128xf32>
    %27 = arith.mulf %26, %25 : vector<1x128xf32>
    %28 = math.exp %27 : vector<1x128xf32>
    %29 = vector.broadcast %28 : vector<1x128xf32> to vector<5x128xf32>
    %30 = arith.mulf %14, %29 : vector<5x128xf32>
    %cst_11 = arith.constant -4.000000e-01 : f32
    %31 = vector.broadcast %cst_11 : f32 to vector<5x128xf32>
    %32 = arith.mulf %31, %30 : vector<5x128xf32>
    %cst_12 = arith.constant 1.000000e+00 : f32
    %33 = vector.broadcast %cst_12 : f32 to vector<5x128xf32>
    %34 = arith.addf %33, %32 : vector<5x128xf32>
    %35 = math.log %34 : vector<5x128xf32>
    %cst_13 = arith.constant -2.500000e+00 : f32
    %36 = vector.broadcast %cst_13 : f32 to vector<5x128xf32>
    %37 = arith.mulf %36, %35 : vector<5x128xf32>
    %38 = math.exp %37 : vector<5x128xf32>
    %cst_14 = arith.constant dense<0.000000e+00> : vector<128xf32>
    %39 = vector.multi_reduction <add>, %38, %cst_14 [0] : vector<5x128xf32> to vector<128xf32>
    %40 = vector.shape_cast %39 : vector<128xf32> to vector<1x128xf32>
    %41 = math.log %40 : vector<1x128xf32>
    %cst_15 = arith.constant -4.000000e-01 : f32
    %42 = vector.broadcast %cst_15 : f32 to vector<1x128xf32>
    %43 = arith.mulf %42, %41 : vector<1x128xf32>
    %44 = math.exp %43 : vector<1x128xf32>
    %45 = vector.broadcast %44 : vector<1x128xf32> to vector<5x128xf32>
    %46 = arith.mulf %14, %45 : vector<5x128xf32>
    %cst_16 = arith.constant -4.000000e-01 : f32
    %47 = vector.broadcast %cst_16 : f32 to vector<5x128xf32>
    %48 = arith.mulf %47, %46 : vector<5x128xf32>
    %cst_17 = arith.constant 1.000000e+00 : f32
    %49 = vector.broadcast %cst_17 : f32 to vector<5x128xf32>
    %50 = arith.addf %49, %48 : vector<5x128xf32>
    %51 = math.log %50 : vector<5x128xf32>
    %cst_18 = arith.constant -2.500000e+00 : f32
    %52 = vector.broadcast %cst_18 : f32 to vector<5x128xf32>
    %53 = arith.mulf %52, %51 : vector<5x128xf32>
    %54 = math.exp %53 : vector<5x128xf32>
    %cst_19 = arith.constant dense<0.000000e+00> : vector<128xf32>
    %55 = vector.multi_reduction <add>, %54, %cst_19 [0] : vector<5x128xf32> to vector<128xf32>
    %56 = vector.shape_cast %55 : vector<128xf32> to vector<1x128xf32>
    %57 = math.log %56 : vector<1x128xf32>
    %cst_20 = arith.constant -4.000000e-01 : f32
    %58 = vector.broadcast %cst_20 : f32 to vector<1x128xf32>
    %59 = arith.mulf %58, %57 : vector<1x128xf32>
    %60 = math.exp %59 : vector<1x128xf32>
    %61 = vector.broadcast %60 : vector<1x128xf32> to vector<5x128xf32>
    %62 = arith.mulf %14, %61 : vector<5x128xf32>
    %cst_21 = arith.constant -4.000000e-01 : f32
    %63 = vector.broadcast %cst_21 : f32 to vector<5x128xf32>
    %64 = arith.mulf %63, %62 : vector<5x128xf32>
    %cst_22 = arith.constant 1.000000e+00 : f32
    %65 = vector.broadcast %cst_22 : f32 to vector<5x128xf32>
    %66 = arith.addf %65, %64 : vector<5x128xf32>
    %67 = math.log %66 : vector<5x128xf32>
    %cst_23 = arith.constant -2.500000e+00 : f32
    %68 = vector.broadcast %cst_23 : f32 to vector<5x128xf32>
    %69 = arith.mulf %68, %67 : vector<5x128xf32>
    %70 = math.exp %69 : vector<5x128xf32>
    %cst_24 = arith.constant dense<0.000000e+00> : vector<128xf32>
    %71 = vector.multi_reduction <add>, %70, %cst_24 [0] : vector<5x128xf32> to vector<128xf32>
    %72 = vector.shape_cast %71 : vector<128xf32> to vector<1x128xf32>
    %73 = math.log %72 : vector<1x128xf32>
    %cst_25 = arith.constant -4.000000e-01 : f32
    %74 = vector.broadcast %cst_25 : f32 to vector<1x128xf32>
    %75 = arith.mulf %74, %73 : vector<1x128xf32>
    %76 = math.exp %75 : vector<1x128xf32>
    %77 = vector.broadcast %76 : vector<1x128xf32> to vector<5x128xf32>
    %78 = arith.mulf %14, %77 : vector<5x128xf32>
    %cst_26 = arith.constant -4.000000e-01 : f32
    %79 = vector.broadcast %cst_26 : f32 to vector<5x128xf32>
    %80 = arith.mulf %79, %78 : vector<5x128xf32>
    %cst_27 = arith.constant 1.000000e+00 : f32
    %81 = vector.broadcast %cst_27 : f32 to vector<5x128xf32>
    %82 = arith.addf %81, %80 : vector<5x128xf32>
    %83 = math.log %82 : vector<5x128xf32>
    %cst_28 = arith.constant -2.500000e+00 : f32
    %84 = vector.broadcast %cst_28 : f32 to vector<5x128xf32>
    %85 = arith.mulf %84, %83 : vector<5x128xf32>
    %86 = math.exp %85 : vector<5x128xf32>
    %cst_29 = arith.constant dense<0.000000e+00> : vector<128xf32>
    %87 = vector.multi_reduction <add>, %86, %cst_29 [0] : vector<5x128xf32> to vector<128xf32>
    %88 = vector.shape_cast %87 : vector<128xf32> to vector<1x128xf32>
    %89 = math.log %88 : vector<1x128xf32>
    %cst_30 = arith.constant -4.000000e-01 : f32
    %90 = vector.broadcast %cst_30 : f32 to vector<1x128xf32>
    %91 = arith.mulf %90, %89 : vector<1x128xf32>
    %92 = math.exp %91 : vector<1x128xf32>
    %93 = vector.broadcast %92 : vector<1x128xf32> to vector<5x128xf32>
    %94 = arith.mulf %14, %93 : vector<5x128xf32>
    %cst_31 = arith.constant -4.000000e-01 : f32
    %95 = vector.broadcast %cst_31 : f32 to vector<5x128xf32>
    %96 = arith.mulf %95, %94 : vector<5x128xf32>
    %cst_32 = arith.constant 1.000000e+00 : f32
    %97 = vector.broadcast %cst_32 : f32 to vector<5x128xf32>
    %98 = arith.addf %97, %96 : vector<5x128xf32>
    %99 = math.log %98 : vector<5x128xf32>
    %cst_33 = arith.constant -2.500000e+00 : f32
    %100 = vector.broadcast %cst_33 : f32 to vector<5x128xf32>
    %101 = arith.mulf %100, %99 : vector<5x128xf32>
    %102 = math.exp %101 : vector<5x128xf32>
    %cst_34 = arith.constant dense<0.000000e+00> : vector<128xf32>
    %103 = vector.multi_reduction <add>, %102, %cst_34 [0] : vector<5x128xf32> to vector<128xf32>
    %104 = vector.shape_cast %103 : vector<128xf32> to vector<1x128xf32>
    %105 = math.log %104 : vector<1x128xf32>
    %cst_35 = arith.constant 4.000000e-01 : f32
    %106 = vector.broadcast %cst_35 : f32 to vector<1x128xf32>
    %107 = arith.mulf %106, %105 : vector<1x128xf32>
    %108 = math.exp %107 : vector<1x128xf32>
    %cst_36 = arith.constant 1.000000e+00 : f32
    %109 = vector.broadcast %cst_36 : f32 to vector<1x128xf32>
    %110 = arith.subf %108, %109 : vector<1x128xf32>
    %cst_37 = arith.constant 4.000000e-01 : f32
    %111 = vector.broadcast %cst_37 : f32 to vector<1x128xf32>
    %112 = arith.divf %110, %111 : vector<1x128xf32>
    %113 = vector.broadcast %112 : vector<1x128xf32> to vector<5x128xf32>
    %114 = arith.subf %14, %113 : vector<5x128xf32>
    %cst_38 = arith.constant -4.000000e-01 : f32
    %115 = vector.broadcast %cst_38 : f32 to vector<5x128xf32>
    %116 = arith.mulf %115, %114 : vector<5x128xf32>
    %cst_39 = arith.constant 1.000000e+00 : f32
    %117 = vector.broadcast %cst_39 : f32 to vector<5x128xf32>
    %118 = arith.addf %117, %116 : vector<5x128xf32>
    %119 = math.log %118 : vector<5x128xf32>
    %cst_40 = arith.constant -3.000000e+00 : f32
    %120 = vector.broadcast %cst_40 : f32 to vector<5x128xf32>
    %121 = arith.mulf %120, %119 : vector<5x128xf32>
    %122 = math.exp %121 : vector<5x128xf32>
    %cst_41 = arith.constant -5.000000e-01 : f32
    %123 = vector.broadcast %cst_41 : f32 to vector<5x128xf32>
    %124 = arith.mulf %123, %119 : vector<5x128xf32>
    %125 = math.exp %124 : vector<5x128xf32>
    %cst_42 = arith.constant 1.000000e+00 : f32
    %126 = vector.broadcast %cst_42 : f32 to vector<5x128xf32>
    %127 = arith.subf %125, %126 : vector<5x128xf32>
    %cst_43 = arith.constant 2.000000e-01 : f32
    %128 = vector.broadcast %cst_43 : f32 to vector<5x128xf32>
    %129 = arith.divf %127, %128 : vector<5x128xf32>
    %cst_44 = arith.constant 0.833333313 : f32
    %130 = vector.broadcast %cst_44 : f32 to vector<5x128xf32>
    %131 = arith.mulf %122, %130 : vector<5x128xf32>
    %132 = arith.mulf %10, %129 : vector<5x128xf32>
    %133 = arith.subf %131, %132 : vector<5x128xf32>
    %cst_45 = arith.constant dense<0.000000e+00> : vector<128xf32>
    %134 = vector.multi_reduction <add>, %133, %cst_45 [0] : vector<5x128xf32> to vector<128xf32>
    %135 = vector.shape_cast %134 : vector<128xf32> to vector<1x128xf32>
    %c1_i32 = arith.constant 1 : i32
    %136 = arith.muli %arg0, %c1_i32 : i32
    %137 = arith.addi %136, %arg1 : i32
    %c128_i32 = arith.constant 128 : i32
    %138 = arith.muli %137, %c128_i32 : i32
    %139 = tpu.iota {dimensions = array<i32: 1>} : vector<1x128xi32>
    %140 = vector.broadcast %138 : i32 to vector<1x128xi32>
    %141 = arith.addi %140, %139 : vector<1x128xi32>
    %c20_i32 = arith.constant 20 : i32
    %142 = vector.broadcast %c20_i32 : i32 to vector<1x128xi32>
    %143 = arith.cmpi slt, %141, %142 : vector<1x128xi32>
    %cst_46 = arith.constant 0.000000e+00 : f32
    %144 = vector.broadcast %cst_46 : f32 to vector<1x128xf32>
    %145 = arith.select %143, %135, %144 : vector<1x128xi1>, vector<1x128xf32>
    %c0_47 = arith.constant 0 : index
    %c0_48 = arith.constant 0 : index
    %c0_49 = arith.constant 0 : index
    %146 = vector.load %arg4[%c0_47, %c0_48, %c0_49] : memref<1x1x1xf32, #tpu.memory_space<vmem>>, vector<1x1x1xf32>
    %147 = vector.shape_cast %145 : vector<1x128xf32> to vector<1x1x128xf32>
    %cst_50 = arith.constant dense<0.000000e+00> : vector<1xf32>
    %148 = vector.multi_reduction <add>, %147, %cst_50 [1, 2] : vector<1x1x128xf32> to vector<1xf32>
    %149 = vector.shape_cast %148 : vector<1xf32> to vector<1x1x1xf32>
    %150 = vector.extract %149[0, 0, 0] : f32 from vector<1x1x1xf32>
    %151 = vector.broadcast %150 : f32 to vector<1x1xf32>
    %152 = vector.shape_cast %151 : vector<1x1xf32> to vector<1x1x1xf32>
    %153 = arith.addf %146, %152 : vector<1x1x1xf32>
    %c0_51 = arith.constant 0 : index
    %c0_52 = arith.constant 0 : index
    %c0_53 = arith.constant 0 : index
    %154 = vector.load %arg4[%c0_51, %c0_52, %c0_53] : memref<1x1x1xf32, #tpu.memory_space<vmem>>, vector<1x1x1xf32>
    tpu.vector_store %arg4[%c0_51, %c0_52, %c0_53], %153 {strides = array<i32>} : memref<1x1x1xf32, #tpu.memory_space<vmem>>, vector<1x1x1xf32>,
    return
  }
  func.func @transform_0(%arg0: i32, %arg1: i32) -> (i32, i32) {
    %c1_i32 = arith.constant 1 : i32
    %0 = arith.muli %arg0, %c1_i32 : i32
    %1 = arith.addi %0, %arg1 : i32
    %c0_i32 = arith.constant 0 : i32
    %2 = arith.minsi %1, %c0_i32 : i32
    %c0_i32_0 = arith.constant 0 : i32
    %c0_i32_1 = arith.constant 0 : i32
    return %c0_i32_0, %2 : i32, i32
  }
  func.func @transform_1(%arg0: i32, %arg1: i32) -> (i32, i32) {
    %c1_i32 = arith.constant 1 : i32
    %0 = arith.muli %arg0, %c1_i32 : i32
    %1 = arith.addi %0, %arg1 : i32
    %c0_i32 = arith.constant 0 : i32
    %2 = arith.minsi %1, %c0_i32 : i32
    %c0_i32_0 = arith.constant 0 : i32
    %c0_i32_1 = arith.constant 0 : i32
    return %c0_i32_0, %2 : i32, i32
  }
  func.func @transform_2(%arg0: i32, %arg1: i32) -> (i32, i32, i32) {
    %c0_i32 = arith.constant 0 : i32
    %c0_i32_0 = arith.constant 0 : i32
    %c0_i32_1 = arith.constant 0 : i32
    return %arg0, %c0_i32, %c0_i32_0 : i32, i32, i32
  }
}

</mosaic_0001>

<bundles_post_ra>
// kernel: tpu_custom_call.1
= control target key start
LH: loop header
LB: loop body
LE: loop exit
PB: predicated region body
PF: predicated region fallthrough
CT: control target
= control target key end

     0   :  { %7 = vsyncpa [#allocation3], 0  ;;  %s921_s0 = inlined_call_operand.hbm [shape: f32[5,20], index: 0, kind: input, shape index: {}]   ;;  %s922_s1 = inlined_call_operand.hbm [shape: s32[1,20], index: 1, kind: input, shape index: {}]   ;;  %s923_s2 = inlined_call_operand.vmem [shape: f32[2,1,1], index: 2, kind: output, shape index: {}]  }
   0x1   :  { %9 = vsyncpa [#allocation3 + $0x1], 0 }
   0x2   :  { %10 = vsyncpa [#allocation5], 0 }
   0x3   :  { %12 = vsyncpa [#allocation5 + $0x1], 0  ;;  %s792_s9 = smov 0   ;;  %s794_s10 = smov 0  }
   0x4   :  { %s796_s11 = smov 0   ;;  %s798_s12 = smov 0  }
   0x5   :  { %s800_s13 = smov 0  }
   0x6 LB: > { %s520_s14 = sadd.s32 4294967295, %s769_s13   ;;  %s30_s15 = sadd.s32 1, %s765_s12  ;;  %s769_s13 = sphi %s800_s13, %s18_s13   ;;  %s765_s12 = sphi %s798_s12, %s929_s12   ;;  %s761_s11 = sphi %s796_s11, %s928_s11   ;;  %s757_s10 = sphi %s794_s10, %s911_s10   ;;  %s753_s9 = sphi %s792_s9, %s927_s9  }
   0x7   : > { %p32_p0 = scmp.ge.s32.totalorder %s30_s15, 2  ;;  %p750_p1 = scmp.ne.s32.totalorder %s757_s10, 0 }
   0x8   : > { %p51_p2 = scmp.eq.s32.totalorder %s769_s13, 0  ;;  %p56_p3 = scmp.ne.s32.totalorder %s757_s10, %s753_s9 }
   0x9   : > { %s931_s15 = smov (%p32_p0, %s30_s15), 0  ;;  %p57_p4 = scmp.eq.s32.totalorder %s520_s14, 0 }
   0xa   : > { %p52_p5 = por %p750_p1, %p51_p2  ;;  %p546_p7 = scmp.lt.s32.totalorder %s769_s13, 2 }
   0xb   : > { %p822_p6 = por %p57_p4, %p56_p3  ;;  %s151_s19 = sshll.u32 %s921_s0, 4  ;;  %s152_s19 = int_to_ptr.hbm [resolvable:$true] %s151_s19 }
   0xc   : > { %s771_s20 = smov [#allocation2]   ;;  %p830_p8 = pnand %p546_p7, %p52_p5 }
   0xd   : > { %s153_s21 = sshll.u32 %s771_s20, 4  ;;  %p526_p9 = scmp.ge.s32.totalorder %s769_s13, 1  ;;  %s154_s21 = int_to_ptr.vmem [resolvable:$true] %s153_s21 }
   0xe   : > { %p178_p10 = scmp.lt.s32.totalorder %s769_s13, 3  ;;  %s658_s23 = sshra.s32 %s152_s19, 4  ;;  %s659_s23 = int_to_ptr.hbm [resolvable:$true] %s658_s23 }
   0xf   : > { %s660_s24 = scalar_lea.hbm %s659_s23, 8  ;;  %p662_p12 = pneg %p830_p8 }
  0x10   : > { %p661_p11 = scmp.ne.s32.totalorder %s659_s23, %s660_s24  ;;  %s665_s27 = scalar_lea.hbm %s921_s0, 8 }
  0x11   : > { %p667_p1 = scmp.lt.s32.totalorder %s665_s27, %s660_s24 }
  0x12   : > { %p663_p13 = pnand %p662_p12, %p661_p11 }
  0x14   : > { %p664_p0 = pneg %p663_p13 }
  0x16   : > { %p669_p2 = pnand %p667_p1, %p664_p0 }
  0x18   : > { %672 = shalt.err (!%p669_p2)
}
  0x19   : > { %542 = dma.hbm_to_vmem [thread:$0]  (!%p830_p8), %s152_s19, 128, %s154_s21, [#allocation3]  }
  0x1a   : > { %p850_p3 = pnand %p526_p9, %p178_p10  ;;  %s171_s3 = sshll.u32 %s922_s1, 4  ;;  %s172_s3 = int_to_ptr.hbm [resolvable:$true] %s171_s3 }
  0x1b   : > { %s772_s4 = smov [#allocation4]   ;;  %s688_s6 = sshra.s32 %s172_s3, 4  ;;  %s689_s6 = int_to_ptr.hbm [resolvable:$true] %s688_s6 }
  0x1c   : > { %s173_s5 = sshll.u32 %s772_s4, 4  ;;  %s690_s7 = scalar_lea.hbm %s689_s6, 1  ;;  %s174_s5 = int_to_ptr.vmem [resolvable:$true] %s173_s5 }
  0x1d   : > { %p691_p4 = scmp.ne.s32.totalorder %s689_s6, %s690_s7  ;;  %s695_s14 = scalar_lea.hbm %s922_s1, 1 }
  0x1e   : > { %p697_p9 = scmp.lt.s32.totalorder %s695_s14, %s690_s7 }
  0x1f   : > { %p693_p5 = pnand %p691_p4, %p662_p12 }
  0x21   : > { %p694_p7 = pneg %p693_p5 }
  0x23   : > { %p699_p10 = pnand %p697_p9, %p694_p7 }
  0x25   : > { %702 = shalt.err (!%p699_p10)
}
  0x26   : > { %545 = dma.hbm_to_vmem [thread:$0]  (!%p830_p8), %s172_s3, 16, %s174_s5, [#allocation5]  }
  0x27   : > { %182 = sbr.rel (%p850_p3) target bundleno = 651 (0x28b), region = 28  ;;  %s868_s17 = sand.u32 (!%p850_p3), 1, %s757_s10  }
  0x28   : > { %s527_s18 = sshll.u32 (!%p850_p3), %s868_s17, 3  ;;  %s185_s19 = scalar_lea.sflag (!%p850_p3), [#allocation3], %s868_s17 }
  0x29   : > { %s188_s20 = scalar_lea.vmem (!%p850_p3), [#allocation2], %s527_s18 }
  0x2c   : > { %743 = dma.done.wait (%p822_p6), %s185_s19, 128  }
  0x2d   : > { %745 = vsyncadd (%p822_p6), %s185_s19, 4294967168  ;;  %s195_s21 = scalar_lea.sflag [#allocation5], %s868_s17  ;;  %s197_s22 = scalar_lea.vmem [#allocation4], %s868_s17 }
  0x2e   : > { %747 = dma.done.wait (%p822_p6), %s195_s21, 16  }
  0x2f   : > { %749 = vsyncadd (%p822_p6), %s195_s21, 4294967280  ;;  %vm243_vm0 = vcmask 1044480   ;;  %v236_v0 = vld [vmem:[%s188_s20] sm:$0x1f]  ;;  %s530_s16 = sshll.u32 %s761_s11, 7  ;;  %vm419_vm5 = vcmask 1040384  }
  0x30   : > { %v244_v1 = vsel %vm243_vm0, %v236_v0, -inf  ;;  %p227_p6 = scmp.lt.s32.totalorder %s761_s11, 1  ;;  %vm234_vm6 = vcmask 0  }
  0x31   : > { %v245_v2 = vrot.slane %v244_v1, 4 }
  0x32   : > { %s933_s11 = smov (!%p227_p6, %s761_s11), 1 }
  0x33   : > { %v246_v3 = vmax.f32 %v244_v1, %v245_v2  ;;  %s229_s25 = scalar_lea.vmem %s923_s2, %s933_s11 }
  0x35   : > { %v247_v4 = vrot.slane %v246_v3, 2 }
  0x37   : > { %v248_v5 = vmax.f32 %v246_v3, %v247_v4 }
  0x39   : > { %v249_v6 = vrot.slane %v248_v5, 1 }
  0x3b   : > { %v250_v7 = vmax.f32 %v248_v5, %v249_v6 }
  0x3d   : > { %v883_v8 = vsub.f32 %v236_v0, %v250_v7 }
  0x3f   : > { %v252_v9 = vmul.f32 -0.4, %v883_v8 }
  0x41   : > { %v253_v10 = vadd.f32 1.0, %v252_v9 }
  0x43   : > { %600 = vlog2.f32 %v253_v10 }
  0x49   : > { %v601_v11 = vpop.eup %600 }
  0x4a   : > { %v255_v12 = vmul.f32 0.6931472, %v601_v11 }
  0x4c   : > { %v256_v13 = vmul.f32 -2.5, %v255_v12 }
  0x4e   : > { %v257_v14 = vmul.f32 1.442695, %v256_v13 }
  0x50   : > { %602 = vpow2.f32 %v257_v14 }
  0x56   : > { %v603_v15 = vpop.eup %602 }
  0x57   : > { %v259_v16 = vsel %vm243_vm0, %v603_v15, 0.0 }
  0x58   : > { %v260_v17 = vrot.slane %v259_v16, 4 }
  0x5a   : > { %v261_v18 = vadd.f32 %v260_v17, %v259_v16 }
  0x5c   : > { %v262_v19 = vrot.slane %v261_v18, 2 }
  0x5e   : > { %v263_v20 = vadd.f32 %v262_v19, %v261_v18 }
  0x60   : > { %v264_v21 = vrot.slane %v263_v20, 1 }
  0x62   : > { %v265_v22 = vadd.f32 %v264_v21, %v263_v20 }
  0x64   : > { %604 = vlog2.f32 %v265_v22 }
  0x6a   : > { %v605_v23 = vpop.eup %604 }
  0x6b   : > { %v267_v24 = vmul.f32 0.6931472, %v605_v23 }
  0x6d   : > { %v268_v25 = vmul.f32 -0.4, %v267_v24 }
  0x6f   : > { %v269_v26 = vmul.f32 1.442695, %v268_v25 }
  0x71   : > { %606 = vpow2.f32 %v269_v26 }
  0x77   : > { %v607_v27 = vpop.eup %606 }
  0x78   : > { %v271_v28 = vmul.f32 %v607_v27, %v883_v8 }
  0x7a   : > { %v272_v29 = vmul.f32 -0.4, %v271_v28 }
  0x7c   : > { %v273_v30 = vadd.f32 1.0, %v272_v29 }
  0x7e   : > { %608 = vlog2.f32 %v273_v30 }
  0x84   : > { %v609_v31 = vpop.eup %608 }
  0x85   : > { %v275_v32 = vmul.f32 0.6931472, %v609_v31 }
  0x87   : > { %v276_v33 = vmul.f32 -2.5, %v275_v32 }
  0x89   : > { %v277_v34 = vmul.f32 1.442695, %v276_v33 }
  0x8b   : > { %610 = vpow2.f32 %v277_v34 }
  0x91   : > { %v611_v35 = vpop.eup %610 }
  0x92   : > { %v279_v36 = vsel %vm243_vm0, %v611_v35, 0.0 }
  0x93   : > { %v280_v37 = vrot.slane %v279_v36, 4 }
  0x95   : > { %v281_v38 = vadd.f32 %v280_v37, %v279_v36 }
  0x97   : > { %v282_v39 = vrot.slane %v281_v38, 2 }
  0x99   : > { %v283_v40 = vadd.f32 %v282_v39, %v281_v38 }
  0x9b   : > { %v284_v41 = vrot.slane %v283_v40, 1 }
  0x9d   : > { %v285_v42 = vadd.f32 %v284_v41, %v283_v40 }
  0x9f   : > { %612 = vlog2.f32 %v285_v42 }
  0xa5   : > { %v613_v43 = vpop.eup %612 }
  0xa6   : > { %v287_v44 = vmul.f32 0.6931472, %v613_v43 }
  0xa8   : > { %v288_v45 = vmul.f32 -0.4, %v287_v44 }
  0xaa   : > { %v289_v46 = vmul.f32 1.442695, %v288_v45 }
  0xac   : > { %614 = vpow2.f32 %v289_v46 }
  0xb2   : > { %v615_v47 = vpop.eup %614 }
  0xb3   : > { %v291_v48 = vmul.f32 %v615_v47, %v883_v8 }
  0xb5   : > { %v292_v49 = vmul.f32 -0.4, %v291_v48 }
  0xb7   : > { %v293_v50 = vadd.f32 1.0, %v292_v49 }
  0xb9   : > { %616 = vlog2.f32 %v293_v50 }
  0xbf   : > { %v617_v51 = vpop.eup %616 }
  0xc0   : > { %v295_v52 = vmul.f32 0.6931472, %v617_v51 }
  0xc2   : > { %v296_v53 = vmul.f32 -2.5, %v295_v52 }
  0xc4   : > { %v297_v54 = vmul.f32 1.442695, %v296_v53 }
  0xc6   : > { %618 = vpow2.f32 %v297_v54 }
  0xcc   : > { %v619_v55 = vpop.eup %618 }
  0xcd   : > { %v299_v56 = vsel %vm243_vm0, %v619_v55, 0.0 }
  0xce   : > { %v300_v57 = vrot.slane %v299_v56, 4 }
  0xd0   : > { %v301_v58 = vadd.f32 %v300_v57, %v299_v56 }
  0xd2   : > { %v302_v59 = vrot.slane %v301_v58, 2 }
  0xd4   : > { %v303_v60 = vadd.f32 %v302_v59, %v301_v58  ;;  %v773_v58 = vmov 0.4  }
  0xd6   : > { %v304_v61 = vrot.slane %v303_v60, 1 }
  0xd8   : > { %v305_v62 = vadd.f32 %v304_v61, %v303_v60 }
  0xda   : > { %620 = vlog2.f32 %v305_v62 }
  0xe0   : > { %v621_v63 = vpop.eup %620 }
  0xe1   : > { %v307_v0 = vmul.f32 0.6931472, %v621_v63 }
  0xe3   : > { %v308_v1 = vmul.f32 -0.4, %v307_v0 }
  0xe5   : > { %v309_v2 = vmul.f32 1.442695, %v308_v1 }
  0xe7   : > { %622 = vpow2.f32 %v309_v2 }
  0xed   : > { %v623_v3 = vpop.eup %622 }
  0xee   : > { %v311_v4 = vmul.f32 %v623_v3, %v883_v8 }
  0xf0   : > { %v312_v5 = vmul.f32 -0.4, %v311_v4 }
  0xf2   : > { %v313_v6 = vadd.f32 1.0, %v312_v5 }
  0xf4   : > { %624 = vlog2.f32 %v313_v6 }
  0xfa   : > { %v625_v7 = vpop.eup %624 }
  0xfb   : > { %v315_v9 = vmul.f32 0.6931472, %v625_v7 }
  0xfd   : > { %v316_v10 = vmul.f32 -2.5, %v315_v9 }
  0xff   : > { %v317_v11 = vmul.f32 1.442695, %v316_v10 }
 0x101   : > { %626 = vpow2.f32 %v317_v11 }
 0x107   : > { %v627_v12 = vpop.eup %626 }
 0x108   : > { %v319_v13 = vsel %vm243_vm0, %v627_v12, 0.0  ;;  %v774_v12 = vmov 0.2  }
 0x109   : > { %v320_v14 = vrot.slane %v319_v13, 4 }
 0x10b   : > { %v321_v15 = vadd.f32 %v320_v14, %v319_v13 }
 0x10d   : > { %v322_v16 = vrot.slane %v321_v15, 2 }
 0x10f   : > { %v323_v17 = vadd.f32 %v322_v16, %v321_v15 }
 0x111   : > { %v324_v18 = vrot.slane %v323_v17, 1 }
 0x113   : > { %v325_v19 = vadd.f32 %v324_v18, %v323_v17 }
 0x115   : > { %628 = vlog2.f32 %v325_v19 }
 0x11b   : > { %v629_v20 = vpop.eup %628 }
 0x11c   : > { %v327_v21 = vmul.f32 0.6931472, %v629_v20 }
 0x11e   : > { %v328_v22 = vmul.f32 -0.4, %v327_v21 }
 0x120   : > { %v329_v23 = vmul.f32 1.442695, %v328_v22  ;;  %v237_v22 = vlaneseq }
 0x122   : > { %630 = vpow2.f32 %v329_v23 }
 0x128   : > { %v631_v24 = vpop.eup %630 }
 0x129   : > { %v331_v25 = vmul.f32 %v631_v24, %v883_v8 }
 0x12b   : > { %v332_v26 = vmul.f32 -0.4, %v331_v25 }
 0x12d   : > { %v333_v27 = vadd.f32 1.0, %v332_v26  ;;  %v599_v26 = vld [vmem:[%s197_s22] ss:$0 sm:$0xff] }
 0x12f   : > { %632 = vlog2.f32 %v333_v27 }
 0x135   : > { %v633_v28 = vpop.eup %632 }
 0x136   : > { %v335_v29 = vmul.f32 0.6931472, %v633_v28 }
 0x138   : > { %v336_v30 = vmul.f32 -2.5, %v335_v29 }
 0x13a   : > { %v337_v31 = vmul.f32 1.442695, %v336_v30 }
 0x13c   : > { %634 = vpow2.f32 %v337_v31 }
 0x142   : > { %v635_v32 = vpop.eup %634 }
 0x143   : > { %v339_v33 = vsel %vm243_vm0, %v635_v32, 0.0  ;;  %v775_v32 = vmov 0.05  }
 0x144   : > { %v340_v34 = vrot.slane %v339_v33, 4 }
 0x146   : > { %v341_v35 = vadd.f32 %v340_v34, %v339_v33 }
 0x148   : > { %v342_v36 = vrot.slane %v341_v35, 2 }
 0x14a   : > { %v343_v37 = vadd.f32 %v342_v36, %v341_v35 }
 0x14c   : > { %v344_v38 = vrot.slane %v343_v37, 1 }
 0x14e   : > { %v345_v39 = vadd.f32 %v344_v38, %v343_v37 }
 0x150   : > { %636 = vlog2.f32 %v345_v39 }
 0x156   : > { %v637_v40 = vpop.eup %636 }
 0x157   : > { %v347_v41 = vmul.f32 0.6931472, %v637_v40  ;;  %v413_v40 = vand.u32 127, %v237_v22 }
 0x159   : > { %v348_v42 = vmul.f32 -0.4, %v347_v41 }
 0x15b   : > { %v349_v43 = vmul.f32 1.442695, %v348_v42  ;;  %v414_v42 = vstv %s530_s16 }
 0x15d   : > { %638 = vpow2.f32 %v349_v43 }
 0x163   : > { %v639_v44 = vpop.eup %638 }
 0x164   : > { %v351_v45 = vmul.f32 %v639_v44, %v883_v8  ;;  %v415_v44 = vadd.s32 %v414_v42, %v413_v40 }
 0x166   : > { %v352_v46 = vmul.f32 -0.4, %v351_v45  ;;  %vm416_vm4 = vcmp.lt.s32.totalorder %v415_v44, 20 }
 0x168   : > { %v353_v47 = vadd.f32 1.0, %v352_v46 }
 0x16a   : > { %640 = vlog2.f32 %v353_v47 }
 0x170   : > { %v641_v48 = vpop.eup %640 }
 0x171   : > { %v355_v49 = vmul.f32 0.6931472, %v641_v48 }
 0x173   : > { %v356_v50 = vmul.f32 -2.5, %v355_v49 }
 0x175   : > { %v357_v51 = vmul.f32 1.442695, %v356_v50  ;;  %v776_v50 = vmov 0.0  }
 0x176   : > { %235 = vst.msk [vmem:[%s229_s25] sm:$0x1] %vm234_vm6, %v776_v50 }
 0x177   : > { %642 = vpow2.f32 %v357_v51 }
 0x178   : > { %644 = vrcp.f32 %v773_v58 }
 0x17d   : > { %v643_v52 = vpop.eup %642  ;;  %v418_v58 = vld [vmem:[%s229_s25] sm:$0x1] }
 0x17e   : > { %v359_v53 = vsel %vm243_vm0, %v643_v52, 0.0  ;;  %v645_v61 = vpop.eup %644 }
 0x17f   : > { %v360_v54 = vrot.slane %v359_v53, 4  ;;  %v373_v62 = vmul.f32 0.4, %v645_v61  ;;  %vm377_vm1 = vweird.f32 %v645_v61 }
 0x181   : > { %v361_v55 = vadd.f32 %v360_v54, %v359_v53  ;;  %v374_v1 = vsub.f32 1.0, %v373_v62 }
 0x183   : > { %v362_v56 = vrot.slane %v361_v55, 2  ;;  %v375_v4 = vmul.f32 %v645_v61, %v374_v1 }
 0x185   : > { %v363_v57 = vadd.f32 %v362_v56, %v361_v55  ;;  %v376_v5 = vadd.f32 %v645_v61, %v375_v4 }
 0x187   : > { %v364_v59 = vrot.slane %v363_v57, 1  ;;  %v378_v7 = vsel %vm377_vm1, %v645_v61, %v376_v5 }
 0x189   : > { %v365_v60 = vadd.f32 %v364_v59, %v363_v57 }
 0x18b   : > { %646 = vlog2.f32 %v365_v60 }
 0x191   : > { %v647_v63 = vpop.eup %646 }
 0x192   : > { %v367_v0 = vmul.f32 0.6931472, %v647_v63 }
 0x194   : > { %v368_v2 = vmul.f32 0.4, %v367_v0 }
 0x196   : > { %v369_v3 = vmul.f32 1.442695, %v368_v2 }
 0x198   : > { %648 = vpow2.f32 %v369_v3 }
 0x199   : > { %650 = vrcp.f32 %v774_v12 }
 0x19e   : > { %v649_v6 = vpop.eup %648 }
 0x19f   : > { %v528_v9 = vadd.f32 -1.0, %v649_v6  ;;  %v651_v15 = vpop.eup %650 }
 0x1a0   : > { %v393_v16 = vmul.f32 0.2, %v651_v15  ;;  %vm397_vm2 = vweird.f32 %v651_v15 }
 0x1a1   : > { %v379_v10 = vmul.f32 %v528_v9, %v378_v7 }
 0x1a2   : > { %v394_v19 = vsub.f32 1.0, %v393_v16 }
 0x1a3   : > { %v380_v11 = vsub.f32 %v883_v8, %v379_v10  ;;  %v238_v8 = vshrl.u32 %v237_v22, 7 }
 0x1a4   : > { %v395_v25 = vmul.f32 %v651_v15, %v394_v19 }
 0x1a5   : > { %v381_v13 = vmul.f32 -0.4, %v380_v11  ;;  %vm241_vm3 = vcmp.eq.s32.totalorder %v238_v8, %v599_v26 }
 0x1a6   : > { %v396_v27 = vadd.f32 %v651_v15, %v395_v25  ;;  %v242_v33 = vsel %vm241_vm3, 0.8, %v775_v32 }
 0x1a7   : > { %v382_v14 = vadd.f32 1.0, %v381_v13 }
 0x1a8   : > { %v398_v30 = vsel %vm397_vm2, %v651_v15, %v396_v27 }
 0x1a9   : > { %652 = vlog2.f32 %v382_v14 }
 0x1af   : > { %v653_v17 = vpop.eup %652 }
 0x1b0   : > { %v384_v18 = vmul.f32 0.6931472, %v653_v17 }
 0x1b2   : > { %v385_v20 = vmul.f32 -3.0, %v384_v18  ;;  %v388_v21 = vmul.f32 -0.5, %v384_v18 }
 0x1b4   : > { %v386_v23 = vmul.f32 1.442695, %v385_v20  ;;  %v389_v24 = vmul.f32 1.442695, %v388_v21 }
 0x1b6   : > { %654 = vpow2.f32 %v386_v23 }
 0x1b7   : > { %656 = vpow2.f32 %v389_v24 }
 0x1bc   : > { %v655_v28 = vpop.eup %654 }
 0x1bd   : > { %v657_v29 = vpop.eup %656  ;;  %v400_v35 = vmul.f32 0.8333333, %v655_v28 }
 0x1be   : > { %v529_v31 = vadd.f32 -1.0, %v657_v29 }
 0x1c0   : > { %v399_v34 = vmul.f32 %v529_v31, %v398_v30 }
 0x1c2   : > { %v401_v36 = vmul.f32 %v399_v34, %v242_v33 }
 0x1c4   : > { %v402_v37 = vsub.f32 %v400_v35, %v401_v36 }
 0x1c6   : > { %v403_v38 = vsel %vm243_vm0, %v402_v37, 0.0 }
 0x1c7   : > { %v404_v39 = vrot.slane %v403_v38, 4 }
 0x1c9   : > { %v405_v41 = vadd.f32 %v404_v39, %v403_v38 }
 0x1cb   : > { %v406_v43 = vrot.slane %v405_v41, 2 }
 0x1cd   : > { %v407_v45 = vadd.f32 %v406_v43, %v405_v41 }
 0x1cf   : > { %v408_v46 = vrot.slane %v407_v45, 1 }
 0x1d1   : > { %v409_v47 = vadd.f32 %v408_v46, %v407_v45 }
 0x1d3   : > { %v417_v48 = vsel %vm416_vm4, %v409_v47, 0.0 }
 0x1d4   : > { %v420_v49 = vsel %vm419_vm5, %v417_v48, 0.0 }
 0x1d5   : > { %421 = vadd.xlane.f32.xlu0 %v420_v49 }
 0x248   : > { %v422_v51 = vpop.xlane.xlu0 %421 }
 0x249   : > { %v423_v52 = vrot.slane %v422_v51, 4 }
 0x24b   : > { %v424_v53 = vadd.f32 %v423_v52, %v422_v51 }
 0x24d   : > { %v425_v54 = vrot.slane %v424_v53, 2 }
 0x24f   : > { %v426_v55 = vadd.f32 %v425_v54, %v424_v53 }
 0x251   : > { %v427_v56 = vrot.slane %v426_v55, 1 }
 0x253   : > { %v428_v57 = vadd.f32 %v427_v56, %v426_v55 }
 0x255   : > { %533 = vpush %v428_v57 }
 0x286   : > { %s534_s26 = spop %533 }
 0x287   : > { %v430_v59 = vstv %s534_s26 }
 0x288   : > { %v431_v60 = vadd.f32 %v430_v59, %v418_v58 }
 0x28a   : > { %433 = vst.msk [vmem:[%s229_s25] sm:$0x1] %vm234_vm6, %v431_v60 }
 0x28b PF: > { %s18_s13 = sadd.s32 1, %s769_s13   ;;  %s927_s9 = smov %s757_s10 }
 0x28c   : > { %p15_p8 = scmp.ge.s32.totalorder %s18_s13, 4   ;;  %s911_s10 = smov 0  }
 0x28d   : > { %s928_s11 = smov %s765_s12  ;;  %s929_s12 = smov %s931_s15 }
 0x28e   :  { %17 = sbr.rel (!%p15_p8) target bundleno = 6 (0x6), region = 85 }
 0x293   :  { %451 = vsyncpa [#allocation3], 1 }
 0x294   :  { %453 = vsyncpa [#allocation3 + $0x1], 1 }
 0x295   :  { %454 = vsyncpa [#allocation5], 1 }
 0x296   :  { %456 = vsyncpa [#allocation5 + $0x1], 1 }

</bundles_post_ra>
